<compile_context>
chip_gen: v6e
topology: v6e:2x2x1
jax: 0.10.0
libtpu: 0.0.40
codegen_flags: <defaults>
</compile_context>

<pallas_src>
import jax
import jax.numpy as jnp
from jax.experimental import pallas as pl
from jax.experimental.pallas import tpu as pltpu


def _logreg_kernel(z_ref, w_ref, b_ref, o_ref):
    # z_ref: (TM, D_in), w_ref: (TN, D_in) in PyTorch nn.Linear layout,
    # b_ref: (1, TN) f32, o_ref: (TM, TN)
    acc = jax.lax.dot_general(
        z_ref[...], w_ref[...],
        dimension_numbers=(((1,), (1,)), ((), ())),  # contract D_in of both == z @ W.T
        preferred_element_type=jnp.float32,
    )
    o_ref[...] = (acc + b_ref[...]).astype(o_ref.dtype)


def _round_up(x, m):
    return (x + m - 1) // m * m


def gca_forward(z, weight, bias, *, tm=256, tn=None, compute_dtype=None):
    """Pallas implementation of GCA.forward (LogReg linear projection).

    z       : [N, D_in]       node embeddings (frozen GRACE output)
    weight  : [D_out, D_in]   PyTorch nn.Linear layout (NOT pre-transposed)
    bias    : [D_out]
    tm, tn  : row / output-column tiles (auto-shrunk / auto-chosen)
    compute_dtype : optionally cast z & weight (e.g. jnp.bfloat16) — accumulation
                    stays f32 on the MXU.
    returns [N, D_out] in z's original dtype.
    """
    N, D_in = z.shape
    D_out, d_in_w = weight.shape
    assert d_in_w == D_in, "weight must be [D_out, D_in]"

    out_dtype = z.dtype
    if compute_dtype is not None:
        z = z.astype(compute_dtype)
        weight = weight.astype(compute_dtype)
    bias = bias.astype(jnp.float32)  # added onto the f32 MXU accumulator

    # --- pad D_out to a multiple of 128 lanes (unmasked, lane-dense stores) ---
    D_out_p = _round_up(D_out, 128)
    if D_out_p != D_out:
        weight = jnp.pad(weight, ((0, D_out_p - D_out), (0, 0)))
        bias = jnp.pad(bias, (0, D_out_p - D_out))
    bias2d = bias.reshape(1, D_out_p)

    # --- row tile ---
    # Small N: collapse to a single grid step padded only to a multiple of 8
    # (minimal wasted MXU rows).  Large N: pad to a multiple of tm and tile.
    N8 = _round_up(max(N, 8), 8)
    single_step_cap = max(_round_up(tm, 8), 512)
    if N8 <= single_step_cap:
        tm_eff = N8
        N_p = N8
    else:
        tm_eff = _round_up(tm, 8)
        N_p = _round_up(N, tm_eff)
    if N_p != N:
        z = jnp.pad(z, ((0, N_p - N), (0, 0)))

    # --- D_out tile: keep the whole weight VMEM-resident unless it is large ---
    w_item = weight.dtype.itemsize
    if tn is None:
        tn = D_out_p if D_out_p * D_in * w_item <= (8 << 20) else 1024
    tn = min(_round_up(tn, 128), D_out_p)
    while D_out_p % tn != 0:  # tn must evenly tile the padded D_out
        tn -= 128

    grid = (N_p // tm_eff, D_out_p // tn)

    # Scoped-VMEM hint, only for big tiles (never triggers at the demo shapes).
    # Double-buffered z, W, bias, out; tn/tm tiling is the real VMEM lever.
    vmem_est = 2 * (tm_eff * D_in * z.dtype.itemsize
                    + tn * D_in * w_item
                    + tn * 4
                    + tm_eff * tn * out_dtype.itemsize)
    cp_kwargs = dict(dimension_semantics=("parallel", "parallel"))
    if vmem_est > (24 << 20):
        cp_kwargs["vmem_limit_bytes"] = int(min(vmem_est + (8 << 20), 64 << 20))

    out_p = pl.pallas_call(
        _logreg_kernel,
        out_shape=jax.ShapeDtypeStruct((N_p, D_out_p), out_dtype),
        grid_spec=pltpu.PrefetchScalarGridSpec(
            num_scalar_prefetch=0,
            grid=grid,
            in_specs=[
                pl.BlockSpec((tm_eff, D_in), lambda i, j: (i, 0)),
                pl.BlockSpec((tn, D_in), lambda i, j: (j, 0)),  # PyTorch layout, no transpose
                pl.BlockSpec((1, tn), lambda i, j: (0, j)),
            ],
            out_specs=pl.BlockSpec((tm_eff, tn), lambda i, j: (i, j)),
        ),
        compiler_params=pltpu.CompilerParams(**cp_kwargs),
    )(z, weight, bias2d)

    if N_p != N or D_out_p != D_out:
        out_p = out_p[:N, :D_out]
    return out_p


def _xavier_uniform(key, shape, dtype=jnp.float32):
    # matches torch.nn.init.xavier_uniform_ for a 2-D weight [fan_out, fan_in]
    fan_out, fan_in = shape
    limit = (6.0 / (fan_in + fan_out)) ** 0.5
    return jax.random.uniform(key, shape, dtype, minval=-limit, maxval=limit)


if __name__ == "__main__":
    # small, TPU-friendly shapes consistent with the module;
    # N deliberately not tile-aligned to exercise the pad/slice path.
    num_nodes = 300          # number of graph nodes
    embedding_dim = 128      # GCA embedding_dim (LogReg: embedding_dim -> embedding_dim)

    key = jax.random.PRNGKey(0)
    k_z, k_w = jax.random.split(key)

    # deterministic stand-in for the (frozen) GRACE-trained embeddings self.z
    z = jax.random.normal(k_z, (num_nodes, embedding_dim), dtype=jnp.float32)

    # LogReg parameters: xavier_uniform weight, zero bias (as in weights_init)
    weight = _xavier_uniform(k_w, (embedding_dim, embedding_dim))
    bias = jnp.zeros((embedding_dim,), dtype=jnp.float32)

    ref = z @ weight.T + bias

    # f32 path
    out = jax.block_until_ready(gca_forward(z, weight, bias))
    assert out.shape == (num_nodes, embedding_dim)
    assert jnp.allclose(out, ref, atol=1e-4, rtol=1e-4)

    # bf16-input path (v6e/v7x fast path), f32 accumulation — looser tolerance
    out_bf16 = jax.block_until_ready(
        gca_forward(z, weight, bias, compute_dtype=jnp.bfloat16))
    assert out_bf16.shape == (num_nodes, embedding_dim)
    assert jnp.allclose(out_bf16, ref, atol=1e-1, rtol=1e-1)

    print("KERNEL_OK")
</pallas_src>

<mosaic_0001>
module attributes {stable_mosaic.version = 11 : i64} {
  func.func @_logreg_kernel(%arg0: i32, %arg1: i32, %arg2: memref<304x128xf32, #tpu.memory_space<vmem>>, %arg3: memref<128x128xf32, #tpu.memory_space<vmem>>, %arg4: memref<1x128xf32, #tpu.memory_space<vmem>>, %arg5: memref<304x128xf32, #tpu.memory_space<vmem>>) attributes {dimension_semantics = [#tpu.dimension_semantics<parallel>, #tpu.dimension_semantics<parallel>], iteration_bounds = array<i64: 1, 1>, scalar_prefetch = 0 : i64, scratch_operands = 0 : i64, tpu.core_type = #tpu.core_type<tc>, window_params = [{transform_indices = @transform_0, window_bounds = array<i64: 304, 128>}, {transform_indices = @transform_1, window_bounds = array<i64: 128, 128>}, {transform_indices = @transform_2, window_bounds = array<i64: 1, 128>}, {transform_indices = @transform_3, window_bounds = array<i64: 304, 128>}]} {
    %c0 = arith.constant 0 : index
    %c0_0 = arith.constant 0 : index
    %0 = vector.load %arg2[%c0, %c0_0] : memref<304x128xf32, #tpu.memory_space<vmem>>, vector<304x128xf32>
    %c0_1 = arith.constant 0 : index
    %c0_2 = arith.constant 0 : index
    %1 = vector.load %arg3[%c0_1, %c0_2] : memref<128x128xf32, #tpu.memory_space<vmem>>, vector<128x128xf32>
    %cst = arith.constant dense<0.000000e+00> : vector<304x128xf32>
    %2 = tpu.matmul %0, %1, %cst {dimension_numbers = #tpu.dot_dimension_numbers<[1], [1], [0], [0], [0, 0, 1, 0], [], []>} : vector<304x128xf32>, vector<128x128xf32>, vector<304x128xf32> -> vector<304x128xf32>
    %c0_3 = arith.constant 0 : index
    %c0_4 = arith.constant 0 : index
    %3 = vector.load %arg4[%c0_3, %c0_4] : memref<1x128xf32, #tpu.memory_space<vmem>>, vector<1x128xf32>
    %4 = vector.broadcast %3 : vector<1x128xf32> to vector<304x128xf32>
    %5 = arith.addf %2, %4 : vector<304x128xf32>
    %c0_5 = arith.constant 0 : index
    %c0_6 = arith.constant 0 : index
    %6 = vector.load %arg5[%c0_5, %c0_6] : memref<304x128xf32, #tpu.memory_space<vmem>>, vector<304x128xf32>
    tpu.vector_store %arg5[%c0_5, %c0_6], %5 {strides = array<i32>} : memref<304x128xf32, #tpu.memory_space<vmem>>, vector<304x128xf32>,
    return
  }
  func.func @transform_0(%arg0: i32, %arg1: i32) -> (i32, i32) {
    %c0_i32 = arith.constant 0 : i32
    %c0_i32_0 = arith.constant 0 : i32
    return %arg0, %c0_i32 : i32, i32
  }
  func.func @transform_1(%arg0: i32, %arg1: i32) -> (i32, i32) {
    %c0_i32 = arith.constant 0 : i32
    %c0_i32_0 = arith.constant 0 : i32
    return %arg1, %c0_i32 : i32, i32
  }
  func.func @transform_2(%arg0: i32, %arg1: i32) -> (i32, i32) {
    %c0_i32 = arith.constant 0 : i32
    %c0_i32_0 = arith.constant 0 : i32
    return %c0_i32, %arg1 : i32, i32
  }
  func.func @transform_3(%arg0: i32, %arg1: i32) -> (i32, i32) {
    %c0_i32 = arith.constant 0 : i32
    return %arg0, %arg1 : i32, i32
  }
}

</mosaic_0001>

<bundles_post_ra>
// kernel: tpu_custom_call.1
= control target key start
LH: loop header
LB: loop body
LE: loop exit
PB: predicated region body
PF: predicated region fallthrough
CT: control target
= control target key end

     0   :  { %8 = vsyncpa [#allocation3], 0  ;;  %s748_s0 = inlined_call_operand.hbm [shape: f32[304,128], index: 0, kind: input, shape index: {}]   ;;  %s749_s1 = inlined_call_operand.hbm [shape: f32[128,128], index: 1, kind: input, shape index: {}]   ;;  %s750_s2 = inlined_call_operand.vmem [shape: f32[1,128], index: 2, kind: input, shape index: {}]   ;;  %s751_s3 = inlined_call_operand.hbm [shape: f32[304,128], index: 3, kind: output, shape index: {}]  }
   0x1   :  { %9 = vsyncpa [#allocation6], 0 }
   0x2   :  { %10 = vsyncpa [#allocation4], 0  ;;  %s662_s12 = smov [#allocation2]  }
   0x3   :  { %s16_s13 = sshll.u32 %s662_s12, 4  ;;  %s17_s13 = int_to_ptr.vmem [resolvable:$true] %s16_s13 }
   0x4   :  { %s604_s14 = scalar_lea.vmem %s17_s13, 4864  ;;  %p609_p1 = scmp.lt.s32.totalorder %s17_s13, %s17_s13 }
   0x5   :  { %p605_p0 = scmp.ne.s32.totalorder %s17_s13, %s604_s14  ;;  %p610_p2 = scmp.lt.s32.totalorder %s604_s14, %s604_s14 }
   0x7   :  { %p611_p3 = por %p610_p2, %p609_p1 }
   0x9   :  { %p612_p4 = pnand %p611_p3, %p605_p0 }
   0xb   :  { %615 = shalt.err (!%p612_p4)
}
   0xc   :  { %s663_s15 = smov 128   ;;  %s664_s16 = smov 8  }
   0xd   :  { %22 = dma.hbm_to_vmem [thread:$0]  %s748_s0, 4864, %s17_s13, [#allocation3], %s663_s15, %s663_s15, %s664_s16  }
   0xe   :  { %s665_s19 = smov [#allocation5]  }
   0xf   :  { %s28_s20 = sshll.u32 %s665_s19, 4  ;;  %s29_s20 = int_to_ptr.vmem [resolvable:$true] %s28_s20 }
  0x10   :  { %s624_s21 = scalar_lea.vmem %s29_s20, 2048  ;;  %p629_p6 = scmp.lt.s32.totalorder %s29_s20, %s29_s20 }
  0x11   :  { %p625_p5 = scmp.ne.s32.totalorder %s29_s20, %s624_s21  ;;  %p630_p7 = scmp.lt.s32.totalorder %s624_s21, %s624_s21 }
  0x13   :  { %p631_p8 = por %p630_p7, %p629_p6 }
  0x15   :  { %p632_p9 = pnand %p631_p8, %p625_p5 }
  0x17   :  { %635 = shalt.err (!%p632_p9)
}
  0x18   :  { %34 = dma.hbm_to_vmem [thread:$0]  %s749_s1, 2048, %s29_s20, [#allocation6], %s663_s15, %s663_s15, %s664_s16  }
  0x19   :  { %656 = dma.done.wait [#allocation3], 4864  }
  0x1a   :  { %657 = vsyncadd [#allocation3], 4294962432 }
  0x1b   :  { %658 = dma.done.wait [#allocation6], 2048  }
  0x1c   :  { %659 = vsyncadd [#allocation6], 4294965248  ;;  %v96_v0 = vld [vmem:[#allocation5 + $0x78] sm:$0xff]  ;;  %v95_v1 = vld [vmem:[#allocation5 + $0x70] sm:$0xff] }
  0x1d   :  { %470 = vmatprep.subr.mxu0 %v96_v0  ;;  %559 = vmatprep.subr.mxu1 %v96_v0  ;;  %v94_v2 = vld [vmem:[#allocation5 + $0x68] sm:$0xff]  ;;  %v43_v3 = vld [vmem:[#allocation2] sm:$0xff]  ;;  %v93_v5 = vld [vmem:[#allocation5 + $0x60] sm:$0xff] }
  0x1e   :  { %471 = vmatpush3.xpose.msra.mxu0 %v96_v0  ;;  %575 = vmatpush3.xpose.msra.mxu1 %v96_v0  ;;  %v63_v4 = vld [vmem:[#allocation2 + $0xa0] sm:$0xff]  ;;  %v92_v6 = vld [vmem:[#allocation5 + $0x58] sm:$0xff]  ;;  %v90_v8 = vld [vmem:[#allocation5 + $0x48] sm:$0xff] }
  0x1f   :  { %472 = vmatprep.subr.mxu0 %v95_v1  ;;  %560 = vmatprep.subr.mxu1 %v95_v1  ;;  %v91_v7 = vld [vmem:[#allocation5 + $0x50] sm:$0xff]  ;;  %v89_v9 = vld [vmem:[#allocation5 + $0x40] sm:$0xff]  ;;  %v88_v10 = vld [vmem:[#allocation5 + $0x38] sm:$0xff] }
  0x20   :  { %502 = vmatprep.mubr.f32.mxu0 %v43_v3  ;;  %532 = vmatprep.mubr.f32.mxu1 %v63_v4  ;;  %v87_v11 = vld [vmem:[#allocation5 + $0x30] sm:$0xff]  ;;  %v86_v12 = vld [vmem:[#allocation5 + $0x28] sm:$0xff]  ;;  %v85_v13 = vld [vmem:[#allocation5 + $0x20] sm:$0xff] }
  0x21   :  { %v84_v14 = vld [vmem:[#allocation5 + $0x18] sm:$0xff]  ;;  %v83_v15 = vld [vmem:[#allocation5 + $0x10] sm:$0xff]  ;;  %v82_v16 = vld [vmem:[#allocation5 + $0x8] sm:$0xff] }
  0x22   :  { %473 = vmatpush3.xpose.msra.mxu0 %v95_v1  ;;  %576 = vmatpush3.xpose.msra.mxu1 %v95_v1  ;;  %v81_v17 = vld [vmem:[#allocation5] sm:$0xff]  ;;  %v44_v18 = vld [vmem:[#allocation2 + $0x8] sm:$0xff]  ;;  %v46_v22 = vld [vmem:[#allocation2 + $0x18] sm:$0xff] }
  0x23   :  { %474 = vmatprep.subr.mxu0 %v94_v2  ;;  %561 = vmatprep.subr.mxu1 %v94_v2  ;;  %v64_v19 = vld [vmem:[#allocation2 + $0xa8] sm:$0xff]  ;;  %v45_v20 = vld [vmem:[#allocation2 + $0x10] sm:$0xff]  ;;  %v66_v23 = vld [vmem:[#allocation2 + $0xb8] sm:$0xff] }
  0x24   :  { %v65_v21 = vld [vmem:[#allocation2 + $0xb0] sm:$0xff]  ;;  %v47_v24 = vld [vmem:[#allocation2 + $0x20] sm:$0xff]  ;;  %v48_v26 = vld [vmem:[#allocation2 + $0x28] sm:$0xff] }
  0x25   :  { %v67_v25 = vld [vmem:[#allocation2 + $0xc0] sm:$0xff]  ;;  %v68_v27 = vld [vmem:[#allocation2 + $0xc8] sm:$0xff]  ;;  %v49_v28 = vld [vmem:[#allocation2 + $0x30] sm:$0xff] }
  0x26   :  { %475 = vmatpush3.xpose.msra.mxu0 %v94_v2  ;;  %577 = vmatpush3.xpose.msra.mxu1 %v94_v2  ;;  %v69_v29 = vld [vmem:[#allocation2 + $0xd0] sm:$0xff]  ;;  %v50_v30 = vld [vmem:[#allocation2 + $0x38] sm:$0xff]  ;;  %v51_v32 = vld [vmem:[#allocation2 + $0x40] sm:$0xff] }
  0x27   :  { %476 = vmatprep.subr.mxu0 %v93_v5  ;;  %562 = vmatprep.subr.mxu1 %v93_v5  ;;  %v70_v31 = vld [vmem:[#allocation2 + $0xd8] sm:$0xff]  ;;  %v71_v33 = vld [vmem:[#allocation2 + $0xe0] sm:$0xff]  ;;  %v52_v34 = vld [vmem:[#allocation2 + $0x48] sm:$0xff] }
  0x28   :  { %v72_v35 = vld [vmem:[#allocation2 + $0xe8] sm:$0xff]  ;;  %v53_v36 = vld [vmem:[#allocation2 + $0x50] sm:$0xff]  ;;  %v54_v38 = vld [vmem:[#allocation2 + $0x58] sm:$0xff] }
  0x29   :  { %v73_v37 = vld [vmem:[#allocation2 + $0xf0] sm:$0xff]  ;;  %v74_v39 = vld [vmem:[#allocation2 + $0xf8] sm:$0xff]  ;;  %v55_v40 = vld [vmem:[#allocation2 + $0x60] sm:$0xff] }
  0x2a   :  { %477 = vmatpush3.xpose.msra.mxu0 %v93_v5  ;;  %578 = vmatpush3.xpose.msra.mxu1 %v93_v5  ;;  %v75_v41 = vld [vmem:[#allocation2 + $0x100] sm:$0xff]  ;;  %v56_v42 = vld [vmem:[#allocation2 + $0x68] sm:$0xff]  ;;  %v57_v44 = vld [vmem:[#allocation2 + $0x70] sm:$0xff] }
  0x2b   :  { %478 = vmatprep.subr.mxu0 %v92_v6  ;;  %563 = vmatprep.subr.mxu1 %v92_v6  ;;  %v76_v43 = vld [vmem:[#allocation2 + $0x108] sm:$0xff]  ;;  %v77_v45 = vld [vmem:[#allocation2 + $0x110] sm:$0xff]  ;;  %v58_v46 = vld [vmem:[#allocation2 + $0x78] sm:$0xff] }
  0x2c   :  { %v78_v47 = vld [vmem:[#allocation2 + $0x118] sm:$0xff]  ;;  %v59_v48 = vld [vmem:[#allocation2 + $0x80] sm:$0xff]  ;;  %v60_v50 = vld [vmem:[#allocation2 + $0x88] sm:$0xff] }
  0x2d   :  { %v79_v49 = vld [vmem:[#allocation2 + $0x120] sm:$0xff]  ;;  %v80_v51 = vld [vmem:[#allocation2 + $0x128] sm:$0xff]  ;;  %v61_v52 = vld [vmem:[#allocation2 + $0x90] sm:$0xff] }
  0x2e   :  { %479 = vmatpush3.xpose.msra.mxu0 %v92_v6  ;;  %579 = vmatpush3.xpose.msra.mxu1 %v92_v6  ;;  %v62_v53 = vld [vmem:[#allocation2 + $0x98] sm:$0xff]  ;;  %v702_v54 = vld [vmem:[%s750_s2] ss:$0 sm:$0xff]  ;;  %s666_s2 = smov [#allocation7]  }
  0x2f   :  { %480 = vmatprep.subr.mxu0 %v91_v7  ;;  %564 = vmatprep.subr.mxu1 %v91_v7  ;;  %s402_s24 = sshll.u32 %s666_s2, 4  ;;  %s403_s24 = int_to_ptr.vmem [resolvable:$true] %s402_s24 }
  0x30   :  { %s636_s25 = scalar_lea.vmem %s403_s24, 4864  ;;  %p641_p11 = scmp.lt.s32.totalorder %s403_s24, %s403_s24 }
  0x31   :  { %p637_p10 = scmp.ne.s32.totalorder %s403_s24, %s636_s25  ;;  %p642_p12 = scmp.lt.s32.totalorder %s636_s25, %s636_s25 }
  0x32   :  { %481 = vmatpush3.xpose.msra.mxu0 %v91_v7  ;;  %580 = vmatpush3.xpose.msra.mxu1 %v91_v7 }
  0x33   :  { %482 = vmatprep.subr.mxu0 %v90_v8  ;;  %565 = vmatprep.subr.mxu1 %v90_v8  ;;  %p643_p13 = por %p642_p12, %p641_p11 }
  0x35   :  { %p644_p0 = pnand %p643_p13, %p637_p10 }
  0x36   :  { %483 = vmatpush3.xpose.msra.mxu0 %v90_v8  ;;  %581 = vmatpush3.xpose.msra.mxu1 %v90_v8 }
  0x37   :  { %484 = vmatprep.subr.mxu0 %v89_v9  ;;  %566 = vmatprep.subr.mxu1 %v89_v9 }
  0x3a   :  { %485 = vmatpush3.xpose.msra.mxu0 %v89_v9  ;;  %582 = vmatpush3.xpose.msra.mxu1 %v89_v9 }
  0x3b   :  { %486 = vmatprep.subr.mxu0 %v88_v10  ;;  %567 = vmatprep.subr.mxu1 %v88_v10 }
  0x3e   :  { %487 = vmatpush3.xpose.msra.mxu0 %v88_v10  ;;  %583 = vmatpush3.xpose.msra.mxu1 %v88_v10 }
  0x3f   :  { %488 = vmatprep.subr.mxu0 %v87_v11  ;;  %568 = vmatprep.subr.mxu1 %v87_v11 }
  0x42   :  { %489 = vmatpush3.xpose.msra.mxu0 %v87_v11  ;;  %584 = vmatpush3.xpose.msra.mxu1 %v87_v11 }
  0x43   :  { %490 = vmatprep.subr.mxu0 %v86_v12  ;;  %569 = vmatprep.subr.mxu1 %v86_v12 }
  0x46   :  { %491 = vmatpush3.xpose.msra.mxu0 %v86_v12  ;;  %585 = vmatpush3.xpose.msra.mxu1 %v86_v12 }
  0x47   :  { %492 = vmatprep.subr.mxu0 %v85_v13  ;;  %570 = vmatprep.subr.mxu1 %v85_v13 }
  0x4a   :  { %493 = vmatpush3.xpose.msra.mxu0 %v85_v13  ;;  %586 = vmatpush3.xpose.msra.mxu1 %v85_v13 }
  0x4b   :  { %494 = vmatprep.subr.mxu0 %v84_v14  ;;  %571 = vmatprep.subr.mxu1 %v84_v14 }
  0x4e   :  { %495 = vmatpush3.xpose.msra.mxu0 %v84_v14  ;;  %587 = vmatpush3.xpose.msra.mxu1 %v84_v14 }
  0x4f   :  { %496 = vmatprep.subr.mxu0 %v83_v15  ;;  %572 = vmatprep.subr.mxu1 %v83_v15 }
  0x52   :  { %497 = vmatpush3.xpose.msra.mxu0 %v83_v15  ;;  %588 = vmatpush3.xpose.msra.mxu1 %v83_v15 }
  0x53   :  { %498 = vmatprep.subr.mxu0 %v82_v16  ;;  %573 = vmatprep.subr.mxu1 %v82_v16 }
  0x56   :  { %499 = vmatpush3.xpose.msra.mxu0 %v82_v16  ;;  %589 = vmatpush3.xpose.msra.mxu1 %v82_v16 }
  0x57   :  { %500 = vmatprep.subr.mxu0 %v81_v17  ;;  %574 = vmatprep.subr.mxu1 %v81_v17 }
  0x5a   :  { %501 = vmatpush3.xpose.msra.mxu0 %v81_v17  ;;  %590 = vmatpush3.xpose.msra.mxu1 %v81_v17 }
  0x5d   :  { %503 = vmatmul.mubr.f32.vlgmr.msra.gmra.mxu0 %v44_v18  ;;  %533 = vmatmul.mubr.f32.vlgmr.msra.gmra.mxu1 %v64_v19 }
  0x5e   :  { %505 = vmatprep.mubr.f32.mxu0 %v45_v20  ;;  %535 = vmatprep.mubr.f32.mxu1 %v65_v21 }
  0x61   :  { %506 = vmatmul.mubr.f32.gmra.mxu0 %v46_v22  ;;  %536 = vmatmul.mubr.f32.gmra.mxu1 %v66_v23 }
  0x62   :  { %508 = vmatprep.mubr.f32.mxu0 %v47_v24  ;;  %538 = vmatprep.mubr.f32.mxu1 %v67_v25 }
  0x65   :  { %509 = vmatmul.mubr.f32.gmra.mxu0 %v48_v26  ;;  %539 = vmatmul.mubr.f32.gmra.mxu1 %v68_v27 }
  0x66   :  { %511 = vmatprep.mubr.f32.mxu0 %v49_v28  ;;  %541 = vmatprep.mubr.f32.mxu1 %v69_v29 }
  0x69   :  { %512 = vmatmul.mubr.f32.gmra.mxu0 %v50_v30  ;;  %542 = vmatmul.mubr.f32.gmra.mxu1 %v70_v31 }
  0x6a   :  { %514 = vmatprep.mubr.f32.mxu0 %v51_v32  ;;  %544 = vmatprep.mubr.f32.mxu1 %v71_v33 }
  0x6d   :  { %515 = vmatmul.mubr.f32.gmra.mxu0 %v52_v34  ;;  %545 = vmatmul.mubr.f32.gmra.mxu1 %v72_v35 }
  0x6e   :  { %517 = vmatprep.mubr.f32.mxu0 %v53_v36  ;;  %547 = vmatprep.mubr.f32.mxu1 %v73_v37 }
  0x71   :  { %518 = vmatmul.mubr.f32.gmra.mxu0 %v54_v38  ;;  %548 = vmatmul.mubr.f32.gmra.mxu1 %v74_v39 }
  0x72   :  { %520 = vmatprep.mubr.f32.mxu0 %v55_v40  ;;  %550 = vmatprep.mubr.f32.mxu1 %v75_v41 }
  0x75   :  { %521 = vmatmul.mubr.f32.gmra.mxu0 %v56_v42  ;;  %551 = vmatmul.mubr.f32.gmra.mxu1 %v76_v43 }
  0x76   :  { %523 = vmatprep.mubr.f32.mxu0 %v57_v44  ;;  %553 = vmatprep.mubr.f32.mxu1 %v77_v45 }
  0x79   :  { %524 = vmatmul.mubr.f32.gmra.mxu0 %v58_v46  ;;  %554 = vmatmul.mubr.f32.gmra.mxu1 %v78_v47 }
  0x7a   :  { %526 = vmatprep.mubr.f32.mxu0 %v59_v48  ;;  %556 = vmatprep.mubr.f32.mxu1 %v79_v49 }
  0x7d   :  { %527 = vmatmul.mubr.f32.gmra.mxu0 %v60_v50  ;;  %557 = vmatmul.mubr.f32.gmra.mxu1 %v80_v51 }
  0x7e   :  { %529 = vmatprep.mubr.f32.mxu0 %v61_v52 }
  0x81   :  { %530 = vmatmul.mubr.f32.gmra.mxu0 %v62_v53 }
 0x11d   :  { %v504_v55 = vpop.f32.mrf.mxu0  ;;  %v534_v56 = vpop.f32.mrf.mxu1 }
 0x11e   :  { %v176_v57 = vadd.f32 %v504_v55, %v702_v54  ;;  %v276_v58 = vadd.f32 %v534_v56, %v702_v54 }
 0x11f   :  { %v170_v59 = vpop.f32.mrf.mxu0  ;;  %v270_v60 = vpop.f32.mrf.mxu1 }
 0x120   :  { %360 = vst [vmem:[#allocation7 + $0x8] sm:$0xff] %v176_v57  ;;  %v171_v61 = vadd.f32 %v702_v54, %v170_v59  ;;  %380 = vst [vmem:[#allocation7 + $0xa8] sm:$0xff] %v276_v58  ;;  %v271_v62 = vadd.f32 %v702_v54, %v270_v60 }
 0x121   :  { %v507_v63 = vpop.f32.mrf.mxu0  ;;  %v537_v0 = vpop.f32.mrf.mxu1 }
 0x122   :  { %359 = vst [vmem:[#allocation7] sm:$0xff] %v171_v61  ;;  %v186_v1 = vadd.f32 %v507_v63, %v702_v54  ;;  %379 = vst [vmem:[#allocation7 + $0xa0] sm:$0xff] %v271_v62  ;;  %v286_v2 = vadd.f32 %v537_v0, %v702_v54 }
 0x123   :  { %v180_v3 = vpop.f32.mrf.mxu0  ;;  %v280_v4 = vpop.f32.mrf.mxu1 }
 0x124   :  { %362 = vst [vmem:[#allocation7 + $0x18] sm:$0xff] %v186_v1  ;;  %v181_v5 = vadd.f32 %v702_v54, %v180_v3  ;;  %382 = vst [vmem:[#allocation7 + $0xb8] sm:$0xff] %v286_v2  ;;  %v281_v6 = vadd.f32 %v702_v54, %v280_v4 }
 0x125   :  { %v510_v7 = vpop.f32.mrf.mxu0  ;;  %v540_v8 = vpop.f32.mrf.mxu1 }
 0x126   :  { %361 = vst [vmem:[#allocation7 + $0x10] sm:$0xff] %v181_v5  ;;  %v196_v9 = vadd.f32 %v510_v7, %v702_v54  ;;  %381 = vst [vmem:[#allocation7 + $0xb0] sm:$0xff] %v281_v6  ;;  %v296_v10 = vadd.f32 %v540_v8, %v702_v54 }
 0x127   :  { %v190_v11 = vpop.f32.mrf.mxu0  ;;  %v290_v12 = vpop.f32.mrf.mxu1 }
 0x128   :  { %364 = vst [vmem:[#allocation7 + $0x28] sm:$0xff] %v196_v9  ;;  %v191_v13 = vadd.f32 %v702_v54, %v190_v11  ;;  %384 = vst [vmem:[#allocation7 + $0xc8] sm:$0xff] %v296_v10  ;;  %v291_v14 = vadd.f32 %v702_v54, %v290_v12 }
 0x129   :  { %v513_v15 = vpop.f32.mrf.mxu0  ;;  %v543_v16 = vpop.f32.mrf.mxu1 }
 0x12a   :  { %363 = vst [vmem:[#allocation7 + $0x20] sm:$0xff] %v191_v13  ;;  %v206_v17 = vadd.f32 %v513_v15, %v702_v54  ;;  %383 = vst [vmem:[#allocation7 + $0xc0] sm:$0xff] %v291_v14  ;;  %v306_v18 = vadd.f32 %v543_v16, %v702_v54 }
 0x12b   :  { %v200_v19 = vpop.f32.mrf.mxu0  ;;  %v300_v20 = vpop.f32.mrf.mxu1 }
 0x12c   :  { %366 = vst [vmem:[#allocation7 + $0x38] sm:$0xff] %v206_v17  ;;  %v201_v21 = vadd.f32 %v702_v54, %v200_v19  ;;  %386 = vst [vmem:[#allocation7 + $0xd8] sm:$0xff] %v306_v18  ;;  %v301_v22 = vadd.f32 %v702_v54, %v300_v20 }
 0x12d   :  { %v516_v23 = vpop.f32.mrf.mxu0  ;;  %v546_v24 = vpop.f32.mrf.mxu1 }
 0x12e   :  { %365 = vst [vmem:[#allocation7 + $0x30] sm:$0xff] %v201_v21  ;;  %v216_v25 = vadd.f32 %v516_v23, %v702_v54  ;;  %385 = vst [vmem:[#allocation7 + $0xd0] sm:$0xff] %v301_v22  ;;  %v316_v26 = vadd.f32 %v546_v24, %v702_v54 }
 0x12f   :  { %v210_v27 = vpop.f32.mrf.mxu0  ;;  %v310_v28 = vpop.f32.mrf.mxu1 }
 0x130   :  { %368 = vst [vmem:[#allocation7 + $0x48] sm:$0xff] %v216_v25  ;;  %v211_v29 = vadd.f32 %v702_v54, %v210_v27  ;;  %388 = vst [vmem:[#allocation7 + $0xe8] sm:$0xff] %v316_v26  ;;  %v311_v30 = vadd.f32 %v702_v54, %v310_v28 }
 0x131   :  { %v519_v31 = vpop.f32.mrf.mxu0  ;;  %v549_v32 = vpop.f32.mrf.mxu1 }
 0x132   :  { %367 = vst [vmem:[#allocation7 + $0x40] sm:$0xff] %v211_v29  ;;  %v226_v33 = vadd.f32 %v519_v31, %v702_v54  ;;  %387 = vst [vmem:[#allocation7 + $0xe0] sm:$0xff] %v311_v30  ;;  %v326_v34 = vadd.f32 %v549_v32, %v702_v54 }
 0x133   :  { %v220_v35 = vpop.f32.mrf.mxu0  ;;  %v320_v36 = vpop.f32.mrf.mxu1 }
 0x134   :  { %370 = vst [vmem:[#allocation7 + $0x58] sm:$0xff] %v226_v33  ;;  %v221_v37 = vadd.f32 %v702_v54, %v220_v35  ;;  %390 = vst [vmem:[#allocation7 + $0xf8] sm:$0xff] %v326_v34  ;;  %v321_v38 = vadd.f32 %v702_v54, %v320_v36 }
 0x135   :  { %v522_v39 = vpop.f32.mrf.mxu0  ;;  %v552_v40 = vpop.f32.mrf.mxu1 }
 0x136   :  { %369 = vst [vmem:[#allocation7 + $0x50] sm:$0xff] %v221_v37  ;;  %v236_v41 = vadd.f32 %v522_v39, %v702_v54  ;;  %389 = vst [vmem:[#allocation7 + $0xf0] sm:$0xff] %v321_v38  ;;  %v336_v42 = vadd.f32 %v552_v40, %v702_v54 }
 0x137   :  { %v230_v43 = vpop.f32.mrf.mxu0  ;;  %v330_v44 = vpop.f32.mrf.mxu1 }
 0x138   :  { %372 = vst [vmem:[#allocation7 + $0x68] sm:$0xff] %v236_v41  ;;  %v231_v45 = vadd.f32 %v702_v54, %v230_v43  ;;  %392 = vst [vmem:[#allocation7 + $0x108] sm:$0xff] %v336_v42  ;;  %v331_v46 = vadd.f32 %v702_v54, %v330_v44 }
 0x139   :  { %v525_v47 = vpop.f32.mrf.mxu0  ;;  %v555_v48 = vpop.f32.mrf.mxu1 }
 0x13a   :  { %371 = vst [vmem:[#allocation7 + $0x60] sm:$0xff] %v231_v45  ;;  %v246_v49 = vadd.f32 %v525_v47, %v702_v54  ;;  %391 = vst [vmem:[#allocation7 + $0x100] sm:$0xff] %v331_v46  ;;  %v346_v50 = vadd.f32 %v555_v48, %v702_v54 }
 0x13b   :  { %v240_v51 = vpop.f32.mrf.mxu0  ;;  %v340_v52 = vpop.f32.mrf.mxu1 }
 0x13c   :  { %374 = vst [vmem:[#allocation7 + $0x78] sm:$0xff] %v246_v49  ;;  %v241_v53 = vadd.f32 %v702_v54, %v240_v51  ;;  %394 = vst [vmem:[#allocation7 + $0x118] sm:$0xff] %v346_v50  ;;  %v341_v55 = vadd.f32 %v702_v54, %v340_v52 }
 0x13d   :  { %v528_v56 = vpop.f32.mrf.mxu0  ;;  %v558_v57 = vpop.f32.mrf.mxu1 }
 0x13e   :  { %373 = vst [vmem:[#allocation7 + $0x70] sm:$0xff] %v241_v53  ;;  %v256_v58 = vadd.f32 %v528_v56, %v702_v54  ;;  %393 = vst [vmem:[#allocation7 + $0x110] sm:$0xff] %v341_v55  ;;  %v356_v59 = vadd.f32 %v558_v57, %v702_v54 }
 0x13f   :  { %v250_v60 = vpop.f32.mrf.mxu0  ;;  %v350_v61 = vpop.f32.mrf.mxu1 }
 0x140   :  { %376 = vst [vmem:[#allocation7 + $0x88] sm:$0xff] %v256_v58  ;;  %v251_v62 = vadd.f32 %v702_v54, %v250_v60  ;;  %396 = vst [vmem:[#allocation7 + $0x128] sm:$0xff] %v356_v59  ;;  %v351_v63 = vadd.f32 %v702_v54, %v350_v61 }
 0x141   :  { %v531_v0 = vpop.f32.mrf.mxu0 }
 0x142   :  { %375 = vst [vmem:[#allocation7 + $0x80] sm:$0xff] %v251_v62  ;;  %v266_v1 = vadd.f32 %v531_v0, %v702_v54  ;;  %395 = vst [vmem:[#allocation7 + $0x120] sm:$0xff] %v351_v63 }
 0x143   :  { %v260_v2 = vpop.f32.mrf.mxu0 }
 0x144   :  { %378 = vst [vmem:[#allocation7 + $0x98] sm:$0xff] %v266_v1  ;;  %v261_v3 = vadd.f32 %v702_v54, %v260_v2 }
 0x146   :  { %377 = vst [vmem:[#allocation7 + $0x90] sm:$0xff] %v261_v3 }
 0x147   :  { %647 = shalt.err (!%p644_p0)
}
 0x148   :  { %408 = dma.vmem_to_hbm [thread:$0]  %s403_s24, 4864, %s751_s3, [#allocation4], %s663_s15, %s663_s15, %s664_s16  }
 0x149   :  { %660 = dma.done.wait [#allocation4], 4864  }
 0x14a   :  { %661 = vsyncadd [#allocation4], 4294962432 }
 0x14b   :  { %412 = vsyncpa [#allocation3], 1 }
 0x14c   :  { %413 = vsyncpa [#allocation6], 1 }
 0x14d   :  { %414 = vsyncpa [#allocation4], 1 }

</bundles_post_ra>
